<compile_context>
chip_gen: v6e
topology: v6e:2x2x1
jax: 0.10.0
libtpu: 0.0.40
codegen_flags: <defaults>
</compile_context>

<pallas_src>
import numpy as np
import jax
import jax.numpy as jnp
from jax.experimental import pallas as pl
from jax.experimental.pallas import tpu as pltpu


def _pick_row_group(r_total, W, S, itemsize, lane=128, m_budget=4 << 20, max_g=512):
    """Pick g = number of consecutive input rows fused into one matmul row.

    Preference order:
      1) Kin = g*W is a multiple of `lane` (dense input vregs, full MXU K) and g | r_total
         and the (Kin, Kin*S^2) scatter matrix stays under m_budget bytes.
      2) Only the output width Kout = g*S*S*W is a multiple of `lane`.
      3) g = 1.
    Row groups may cross plane boundaries: the one-hot matmul is row-local, so only
    g | N*C*H is required.
    """
    def m_bytes(g):
        return (g * W) * (g * W * S * S) * itemsize

    hi = min(r_total, max_g)
    for g in range(1, hi + 1):
        if r_total % g == 0 and (g * W) % lane == 0 and m_bytes(g) <= m_budget:
            return g
    for g in range(1, hi + 1):
        if r_total % g == 0 and (g * W * S * S) % lane == 0 and m_bytes(g) <= m_budget:
            return g
    return 1


def _nearest_scatter_matrix(W: int, S: int, g: int) -> np.ndarray:
    """One-hot (g*W, g*S*S*W) matrix mapping a flat group of g input rows to the flat
    group of g*S output rows (W-duplication + H-duplication directly in the final
    memory layout), matching PyTorch nearest (src = floor(dst / S)) for integer S."""
    Wo = W * S
    m = np.zeros((g * W, g * S * S * W), dtype=np.float32)
    for r_out in range(g * S):
        r_in = r_out // S
        for q in range(Wo):
            j = q // S
            m[r_in * W + j, r_out * Wo + q] = 1.0
    return m


def _pick_block_rows(RG, Kout, itemsize, sublane):
    """Rows of flat row-groups per grid step: ~8 MiB of output per step, sublane-aligned
    divisor of RG (no ragged last block), capped so big problems give v7x's two
    TensorCores at least ~4 grid steps to split."""
    out_bytes = RG * Kout * itemsize
    target_block = 8 << 20
    want = max(sublane, target_block // max(1, Kout * itemsize))
    if out_bytes > (4 << 20):
        want = min(want, max(sublane, RG // 4))
    want = max(1, min(want, RG))
    for d in range(want, 0, -1):
        if RG % d == 0 and d % sublane == 0:
            return d
    # Fallback: sublane-aligned non-divisor (ragged last block is safe because the
    # one-hot matmul is row-local: padding rows only write to discarded padding rows),
    # or the full extent when RG is smaller than a sublane.
    return min(RG, max(sublane, (want // sublane) * sublane))


def _upsample_kernel(x_ref, m_ref, o_ref):
    # x_ref: (br, Kin)        lane-dense block of flat input row-groups
    # m_ref: (Kin, Kout)      constant one-hot scatter matrix, resident in VMEM
    # o_ref: (br, Kout)       lane-dense flat output block (final memory layout)
    o_ref[...] = jnp.dot(
        x_ref[...], m_ref[...], preferred_element_type=jnp.float32
    ).astype(o_ref.dtype)


def pallas_interpolate_nearest(x: jax.Array, scale_factor: int) -> jax.Array:
    """Equivalent of Interpolate(scale_factor, mode='nearest')(x) for NCHW inputs
    with integer scale_factor (NEXT_STAGE_G's upBlock uses scale_factor=2)."""
    # TODO(synk): bilinear / non-integer scale_factor modes are not implemented.
    N, C, H, W = x.shape
    S = int(scale_factor)
    assert S == scale_factor and S >= 1, "integer scale_factor only"
    Ho, Wo = H * S, W * S

    itemsize = np.dtype(x.dtype).itemsize
    sublane = max(8, 32 // itemsize)          # 8 for f32, 16 for bf16, 32 for int8

    r_total = N * C * H
    g = _pick_row_group(r_total, W, S, itemsize)
    RG = r_total // g                         # number of row-groups
    Kin = g * W                               # flat input width per group (multiple of 128 if possible)
    Kout = g * S * S * W                      # flat output width per group

    # Free, contiguous row-major reshapes (pure views of the NCHW buffers).
    x2 = x.reshape(RG, Kin)
    # One-hot -> exact in bf16 as well; keep everything in the activation dtype.
    m = jnp.asarray(_nearest_scatter_matrix(W, S, g), dtype=x.dtype)

    br = _pick_block_rows(RG, Kout, itemsize, sublane)
    grid = (pl.cdiv(RG, br),)

    # Double-buffered in/out blocks + (double-buffered) scatter matrix.
    vmem_need = (2 * br * (Kin + Kout) + 2 * Kin * Kout) * itemsize
    try:
        info = pltpu.get_tpu_info()
        vmem_cap = int(getattr(info, "vmem_capacity_bytes", 64 << 20))
    except Exception:
        vmem_cap = 64 << 20                   # conservative v7x floor
    ceiling = (vmem_cap * 4) // 5             # leave headroom for Mosaic's own scratch
    vmem_limit = min(ceiling, max(16 << 20, vmem_need + (4 << 20)))
    vmem_limit = max(vmem_limit, vmem_need + (2 << 20))   # never below the true need

    cost = pl.CostEstimate(
        flops=2 * RG * Kin * Kout,
        transcendentals=0,
        bytes_accessed=(RG * Kin + RG * Kout + Kin * Kout) * itemsize,
    )

    out2 = pl.pallas_call(
        _upsample_kernel,
        out_shape=jax.ShapeDtypeStruct((RG, Kout), x.dtype),
        grid=grid,
        in_specs=[
            pl.BlockSpec((br, Kin), lambda i: (i, 0)),
            pl.BlockSpec((Kin, Kout), lambda i: (0, 0)),   # constant -> fetched once, stays resident
        ],
        out_specs=pl.BlockSpec((br, Kout), lambda i: (i, 0)),
        compiler_params=pltpu.CompilerParams(
            dimension_semantics=("parallel",),
            vmem_limit_bytes=int(vmem_limit),
        ),
        cost_estimate=cost,
    )(x2, m)

    return out2.reshape(N, C, Ho, Wo)


if __name__ == "__main__":
    # Matches Interpolate(scale_factor=2, mode='nearest') inside NEXT_STAGE_G's upBlock.
    # TODO(synk): the Conv2d / BatchNorm2d / GLU / ResBlock stages of NEXT_STAGE_G are not
    # part of this kernel; the real win at these sizes is fusing this upsample into the
    # following 3x3 conv's input index_map, which is left to the full-pipeline kernel.
    SCALE = 2

    key = jax.random.PRNGKey(0)
    x = jax.random.normal(key, (2, 4, 16, 16), dtype=jnp.float32)  # NCHW

    out = pallas_interpolate_nearest(x, SCALE)
    out = jax.block_until_ready(out)

    # Pure-JAX reference: nearest upsampling with integer scale == repeat along H and W.
    ref = jnp.repeat(jnp.repeat(x, SCALE, axis=2), SCALE, axis=3)
    assert out.shape == (2, 4, 32, 32), out.shape
    np.testing.assert_allclose(np.asarray(out), np.asarray(ref), rtol=1e-6, atol=1e-6)

    print("KERNEL_OK")
</pallas_src>

<mosaic_0001>
module attributes {stable_mosaic.version = 11 : i64} {
  func.func @_upsample_kernel(%arg0: i32, %arg1: memref<16x128xf32, #tpu.memory_space<vmem>>, %arg2: memref<128x512xf32, #tpu.memory_space<vmem>>, %arg3: memref<16x512xf32, #tpu.memory_space<vmem>>) attributes {dimension_semantics = [#tpu.dimension_semantics<parallel>], iteration_bounds = array<i64: 1>, scalar_prefetch = 0 : i64, scratch_operands = 0 : i64, tpu.core_type = #tpu.core_type<tc>, window_params = [{transform_indices = @transform_0, window_bounds = array<i64: 16, 128>}, {pipeline_mode = #tpu.pipeline_mode<synchronous>, transform_indices = @transform_1, window_bounds = array<i64: 128, 512>}, {transform_indices = @transform_2, window_bounds = array<i64: 16, 512>}]} {
    %c0 = arith.constant 0 : index
    %c0_0 = arith.constant 0 : index
    %0 = vector.load %arg1[%c0, %c0_0] : memref<16x128xf32, #tpu.memory_space<vmem>>, vector<16x128xf32>
    %c0_1 = arith.constant 0 : index
    %c0_2 = arith.constant 0 : index
    %1 = vector.load %arg2[%c0_1, %c0_2] : memref<128x512xf32, #tpu.memory_space<vmem>>, vector<128x512xf32>
    %cst = arith.constant dense<0.000000e+00> : vector<16x512xf32>
    %2 = tpu.matmul %0, %1, %cst {dimension_numbers = #tpu.dot_dimension_numbers<[1], [0], [0], [1], [0, 0, 1, 1], [], []>} : vector<16x128xf32>, vector<128x512xf32>, vector<16x512xf32> -> vector<16x512xf32>
    %c0_3 = arith.constant 0 : index
    %c0_4 = arith.constant 0 : index
    %3 = vector.load %arg3[%c0_3, %c0_4] : memref<16x512xf32, #tpu.memory_space<vmem>>, vector<16x512xf32>
    tpu.vector_store %arg3[%c0_3, %c0_4], %2 {strides = array<i32>} : memref<16x512xf32, #tpu.memory_space<vmem>>, vector<16x512xf32>,
    return
  }
  func.func @transform_0(%arg0: i32) -> (i32, i32) {
    %c0_i32 = arith.constant 0 : i32
    %c0_i32_0 = arith.constant 0 : i32
    return %arg0, %c0_i32 : i32, i32
  }
  func.func @transform_1(%arg0: i32) -> (i32, i32) {
    %c0_i32 = arith.constant 0 : i32
    %c0_i32_0 = arith.constant 0 : i32
    %c0_i32_1 = arith.constant 0 : i32
    return %c0_i32, %c0_i32_0 : i32, i32
  }
  func.func @transform_2(%arg0: i32) -> (i32, i32) {
    %c0_i32 = arith.constant 0 : i32
    %c0_i32_0 = arith.constant 0 : i32
    return %arg0, %c0_i32 : i32, i32
  }
}

</mosaic_0001>

<bundles_post_ra>
// kernel: tpu_custom_call.1
= control target key start
LH: loop header
LB: loop body
LE: loop exit
PB: predicated region body
PF: predicated region fallthrough
CT: control target
= control target key end

     0   :  { %7 = vsyncpa [#allocation3], 0  ;;  %s402_s0 = inlined_call_operand.hbm [shape: f32[16,128], index: 0, kind: input, shape index: {}]   ;;  %s403_s1 = inlined_call_operand.hbm [shape: f32[128,512], index: 1, kind: input, shape index: {}]   ;;  %s404_s2 = inlined_call_operand.hbm [shape: f32[16,512], index: 2, kind: output, shape index: {}]  }
   0x1   :  { %8 = vsyncpa [#allocation6], 0 }
   0x2   :  { %9 = vsyncpa [#allocation4], 0  ;;  %s360_s9 = smov [#allocation2]  }
   0x3   :  { %s15_s10 = sshll.u32 %s360_s9, 4  ;;  %s16_s10 = int_to_ptr.vmem [resolvable:$true] %s15_s10 }
   0x4   :  { %s302_s11 = scalar_lea.vmem %s16_s10, 256  ;;  %p307_p1 = scmp.lt.s32.totalorder %s16_s10, %s16_s10 }
   0x5   :  { %p303_p0 = scmp.ne.s32.totalorder %s16_s10, %s302_s11  ;;  %p308_p2 = scmp.lt.s32.totalorder %s302_s11, %s302_s11 }
   0x7   :  { %p309_p3 = por %p308_p2, %p307_p1 }
   0x9   :  { %p310_p4 = pnand %p309_p3, %p303_p0 }
   0xb   :  { %313 = shalt.err (!%p310_p4)
}
   0xc   :  { %s361_s12 = smov 128   ;;  %s362_s13 = smov 8  }
   0xd   :  { %21 = dma.hbm_to_vmem [thread:$0]  %s402_s0, 256, %s16_s10, [#allocation3], %s361_s12, %s361_s12, %s362_s13  }
   0xe   :  { %s363_s16 = smov [#allocation5]  }
   0xf   :  { %s27_s17 = sshll.u32 %s363_s16, 4  ;;  %s28_s17 = int_to_ptr.vmem [resolvable:$true] %s27_s17 }
  0x10   :  { %s322_s18 = scalar_lea.vmem %s28_s17, 8192  ;;  %p327_p6 = scmp.lt.s32.totalorder %s28_s17, %s28_s17 }
  0x11   :  { %p323_p5 = scmp.ne.s32.totalorder %s28_s17, %s322_s18  ;;  %p328_p7 = scmp.lt.s32.totalorder %s322_s18, %s322_s18 }
  0x13   :  { %p329_p8 = por %p328_p7, %p327_p6 }
  0x15   :  { %p330_p9 = pnand %p329_p8, %p323_p5 }
  0x17   :  { %333 = shalt.err (!%p330_p9)
}
  0x18   :  { %s364_s19 = smov 512   ;;  %s365_s20 = smov 32  }
  0x19   :  { %33 = dma.hbm_to_vmem [thread:$0]  %s403_s1, 8192, %s28_s17, [#allocation6], %s364_s19, %s364_s19, %s365_s20  }
  0x1a   :  { %354 = dma.done.wait [#allocation3], 256  }
  0x1b   :  { %355 = vsyncadd [#allocation3], 4294967040 }
  0x1c   :  { %356 = dma.done.wait [#allocation6], 8192  }
  0x1d   :  { %357 = vsyncadd [#allocation6], 4294959104  ;;  %v366_v0 = vmov 0.0   ;;  %v103_v1 = vld [vmem:[#allocation5 + $0x1e8] sm:$0xff]  ;;  %v105_v2 = vld [vmem:[#allocation5 + $0x1f8] sm:$0xff]  ;;  %s367_s0 = smov [#allocation7]  }
  0x1e   :  { %170 = vmatprep.mubr.f32.mxu0 %v366_v0  ;;  %247 = vmatprep.mubr.f32.mxu1 %v366_v0  ;;  %v102_v3 = vld [vmem:[#allocation5 + $0x1e0] sm:$0xff]  ;;  %v104_v4 = vld [vmem:[#allocation5 + $0x1f0] sm:$0xff]  ;;  %v99_v5 = vld [vmem:[#allocation5 + $0x1c8] sm:$0xff]  ;;  %s273_s1 = sshll.u32 %s367_s0, 4  ;;  %s274_s1 = int_to_ptr.vmem [resolvable:$true] %s273_s1 }
  0x1f   :  { %106 = vmatprep.subr.mxu0 %v103_v1  ;;  %183 = vmatprep.subr.mxu1 %v105_v2  ;;  %v101_v6 = vld [vmem:[#allocation5 + $0x1d8] sm:$0xff]  ;;  %v98_v7 = vld [vmem:[#allocation5 + $0x1c0] sm:$0xff]  ;;  %v100_v8 = vld [vmem:[#allocation5 + $0x1d0] sm:$0xff]  ;;  %s334_s23 = scalar_lea.vmem %s274_s1, 1024  ;;  %p339_p11 = scmp.lt.s32.totalorder %s274_s1, %s274_s1 }
  0x20   :  { %107 = vmatpush1.msra.mxu0 %v102_v3  ;;  %184 = vmatpush1.msra.mxu1 %v104_v4  ;;  %v95_v9 = vld [vmem:[#allocation5 + $0x1a8] sm:$0xff]  ;;  %v97_v10 = vld [vmem:[#allocation5 + $0x1b8] sm:$0xff]  ;;  %v94_v11 = vld [vmem:[#allocation5 + $0x1a0] sm:$0xff]  ;;  %p335_p10 = scmp.ne.s32.totalorder %s274_s1, %s334_s23  ;;  %p340_p12 = scmp.lt.s32.totalorder %s334_s23, %s334_s23 }
  0x21   :  { %108 = vmatprep.subr.mxu0 %v99_v5  ;;  %185 = vmatprep.subr.mxu1 %v101_v6  ;;  %v96_v12 = vld [vmem:[#allocation5 + $0x1b0] sm:$0xff]  ;;  %v91_v13 = vld [vmem:[#allocation5 + $0x188] sm:$0xff]  ;;  %v93_v14 = vld [vmem:[#allocation5 + $0x198] sm:$0xff] }
  0x22   :  { %109 = vmatpush1.msra.mxu0 %v98_v7  ;;  %186 = vmatpush1.msra.mxu1 %v100_v8  ;;  %v90_v15 = vld [vmem:[#allocation5 + $0x180] sm:$0xff]  ;;  %v92_v16 = vld [vmem:[#allocation5 + $0x190] sm:$0xff]  ;;  %v87_v17 = vld [vmem:[#allocation5 + $0x168] sm:$0xff]  ;;  %p341_p13 = por %p340_p12, %p339_p11 }
  0x23   :  { %110 = vmatprep.subr.mxu0 %v95_v9  ;;  %187 = vmatprep.subr.mxu1 %v97_v10  ;;  %v89_v18 = vld [vmem:[#allocation5 + $0x178] sm:$0xff]  ;;  %v86_v19 = vld [vmem:[#allocation5 + $0x160] sm:$0xff]  ;;  %v88_v20 = vld [vmem:[#allocation5 + $0x170] sm:$0xff] }
  0x24   :  { %111 = vmatpush1.msra.mxu0 %v94_v11  ;;  %188 = vmatpush1.msra.mxu1 %v96_v12  ;;  %v83_v21 = vld [vmem:[#allocation5 + $0x148] sm:$0xff]  ;;  %v85_v22 = vld [vmem:[#allocation5 + $0x158] sm:$0xff]  ;;  %v82_v23 = vld [vmem:[#allocation5 + $0x140] sm:$0xff]  ;;  %p342_p0 = pnand %p341_p13, %p335_p10 }
  0x25   :  { %112 = vmatprep.subr.mxu0 %v91_v13  ;;  %189 = vmatprep.subr.mxu1 %v93_v14  ;;  %v84_v24 = vld [vmem:[#allocation5 + $0x150] sm:$0xff]  ;;  %v79_v25 = vld [vmem:[#allocation5 + $0x128] sm:$0xff]  ;;  %v81_v26 = vld [vmem:[#allocation5 + $0x138] sm:$0xff] }
  0x26   :  { %113 = vmatpush1.msra.mxu0 %v90_v15  ;;  %190 = vmatpush1.msra.mxu1 %v92_v16  ;;  %v78_v27 = vld [vmem:[#allocation5 + $0x120] sm:$0xff]  ;;  %v80_v28 = vld [vmem:[#allocation5 + $0x130] sm:$0xff]  ;;  %v75_v29 = vld [vmem:[#allocation5 + $0x108] sm:$0xff] }
  0x27   :  { %114 = vmatprep.subr.mxu0 %v87_v17  ;;  %191 = vmatprep.subr.mxu1 %v89_v18  ;;  %v77_v30 = vld [vmem:[#allocation5 + $0x118] sm:$0xff]  ;;  %v74_v31 = vld [vmem:[#allocation5 + $0x100] sm:$0xff]  ;;  %v76_v32 = vld [vmem:[#allocation5 + $0x110] sm:$0xff] }
  0x28   :  { %115 = vmatpush1.msra.mxu0 %v86_v19  ;;  %192 = vmatpush1.msra.mxu1 %v88_v20  ;;  %v71_v33 = vld [vmem:[#allocation5 + $0xe8] sm:$0xff]  ;;  %v73_v34 = vld [vmem:[#allocation5 + $0xf8] sm:$0xff]  ;;  %v70_v35 = vld [vmem:[#allocation5 + $0xe0] sm:$0xff] }
  0x29   :  { %116 = vmatprep.subr.mxu0 %v83_v21  ;;  %193 = vmatprep.subr.mxu1 %v85_v22  ;;  %v72_v36 = vld [vmem:[#allocation5 + $0xf0] sm:$0xff]  ;;  %v67_v37 = vld [vmem:[#allocation5 + $0xc8] sm:$0xff]  ;;  %v69_v38 = vld [vmem:[#allocation5 + $0xd8] sm:$0xff] }
  0x2a   :  { %117 = vmatpush1.msra.mxu0 %v82_v23  ;;  %194 = vmatpush1.msra.mxu1 %v84_v24  ;;  %v66_v39 = vld [vmem:[#allocation5 + $0xc0] sm:$0xff]  ;;  %v68_v40 = vld [vmem:[#allocation5 + $0xd0] sm:$0xff]  ;;  %v63_v41 = vld [vmem:[#allocation5 + $0xa8] sm:$0xff] }
  0x2b   :  { %118 = vmatprep.subr.mxu0 %v79_v25  ;;  %195 = vmatprep.subr.mxu1 %v81_v26  ;;  %v65_v42 = vld [vmem:[#allocation5 + $0xb8] sm:$0xff]  ;;  %v62_v43 = vld [vmem:[#allocation5 + $0xa0] sm:$0xff]  ;;  %v64_v44 = vld [vmem:[#allocation5 + $0xb0] sm:$0xff] }
  0x2c   :  { %119 = vmatpush1.msra.mxu0 %v78_v27  ;;  %196 = vmatpush1.msra.mxu1 %v80_v28  ;;  %v59_v45 = vld [vmem:[#allocation5 + $0x88] sm:$0xff]  ;;  %v61_v46 = vld [vmem:[#allocation5 + $0x98] sm:$0xff]  ;;  %v58_v47 = vld [vmem:[#allocation5 + $0x80] sm:$0xff] }
  0x2d   :  { %120 = vmatprep.subr.mxu0 %v75_v29  ;;  %197 = vmatprep.subr.mxu1 %v77_v30  ;;  %v60_v48 = vld [vmem:[#allocation5 + $0x90] sm:$0xff]  ;;  %v55_v49 = vld [vmem:[#allocation5 + $0x68] sm:$0xff]  ;;  %v57_v50 = vld [vmem:[#allocation5 + $0x78] sm:$0xff] }
  0x2e   :  { %121 = vmatpush1.msra.mxu0 %v74_v31  ;;  %198 = vmatpush1.msra.mxu1 %v76_v32  ;;  %v54_v51 = vld [vmem:[#allocation5 + $0x60] sm:$0xff]  ;;  %v56_v52 = vld [vmem:[#allocation5 + $0x70] sm:$0xff]  ;;  %v51_v53 = vld [vmem:[#allocation5 + $0x48] sm:$0xff] }
  0x2f   :  { %122 = vmatprep.subr.mxu0 %v71_v33  ;;  %199 = vmatprep.subr.mxu1 %v73_v34  ;;  %v53_v54 = vld [vmem:[#allocation5 + $0x58] sm:$0xff]  ;;  %v50_v55 = vld [vmem:[#allocation5 + $0x40] sm:$0xff]  ;;  %v52_v56 = vld [vmem:[#allocation5 + $0x50] sm:$0xff] }
  0x30   :  { %123 = vmatpush1.msra.mxu0 %v70_v35  ;;  %200 = vmatpush1.msra.mxu1 %v72_v36  ;;  %v47_v57 = vld [vmem:[#allocation5 + $0x28] sm:$0xff]  ;;  %v49_v58 = vld [vmem:[#allocation5 + $0x38] sm:$0xff]  ;;  %v46_v59 = vld [vmem:[#allocation5 + $0x20] sm:$0xff] }
  0x31   :  { %124 = vmatprep.subr.mxu0 %v67_v37  ;;  %201 = vmatprep.subr.mxu1 %v69_v38  ;;  %v48_v60 = vld [vmem:[#allocation5 + $0x30] sm:$0xff]  ;;  %v43_v61 = vld [vmem:[#allocation5 + $0x8] sm:$0xff]  ;;  %v45_v62 = vld [vmem:[#allocation5 + $0x18] sm:$0xff] }
  0x32   :  { %125 = vmatpush1.msra.mxu0 %v66_v39  ;;  %202 = vmatpush1.msra.mxu1 %v68_v40  ;;  %v42_v63 = vld [vmem:[#allocation5] sm:$0xff]  ;;  %v44_v1 = vld [vmem:[#allocation5 + $0x10] sm:$0xff]  ;;  %v41_v3 = vld [vmem:[#allocation2 + $0x8] sm:$0xff] }
  0x33   :  { %126 = vmatprep.subr.mxu0 %v63_v41  ;;  %203 = vmatprep.subr.mxu1 %v65_v42  ;;  %v40_v2 = vld [vmem:[#allocation2] sm:$0xff] }
  0x34   :  { %127 = vmatpush1.msra.mxu0 %v62_v43  ;;  %204 = vmatpush1.msra.mxu1 %v64_v44 }
  0x35   :  { %128 = vmatprep.subr.mxu0 %v59_v45  ;;  %205 = vmatprep.subr.mxu1 %v61_v46 }
  0x36   :  { %129 = vmatpush1.msra.mxu0 %v58_v47  ;;  %206 = vmatpush1.msra.mxu1 %v60_v48 }
  0x37   :  { %130 = vmatprep.subr.mxu0 %v55_v49  ;;  %207 = vmatprep.subr.mxu1 %v57_v50 }
  0x38   :  { %131 = vmatpush1.msra.mxu0 %v54_v51  ;;  %208 = vmatpush1.msra.mxu1 %v56_v52 }
  0x39   :  { %132 = vmatprep.subr.mxu0 %v51_v53  ;;  %209 = vmatprep.subr.mxu1 %v53_v54 }
  0x3a   :  { %133 = vmatpush1.msra.mxu0 %v50_v55  ;;  %210 = vmatpush1.msra.mxu1 %v52_v56 }
  0x3b   :  { %134 = vmatprep.subr.mxu0 %v47_v57  ;;  %211 = vmatprep.subr.mxu1 %v49_v58 }
  0x3c   :  { %135 = vmatpush1.msra.mxu0 %v46_v59  ;;  %212 = vmatpush1.msra.mxu1 %v48_v60 }
  0x3d   :  { %136 = vmatprep.subr.mxu0 %v43_v61  ;;  %213 = vmatprep.subr.mxu1 %v45_v62 }
  0x3e   :  { %137 = vmatpush1.msra.mxu0 %v42_v63  ;;  %214 = vmatpush1.msra.mxu1 %v44_v1 }
  0x3f   :  { %171 = vmatmul.mubr.f32.vlgmr.msra.gmra.mxu0 %v40_v2  ;;  %248 = vmatmul.mubr.f32.vlgmr.msra.gmra.mxu1 %v40_v2 }
  0x40   :  { %176 = vmatprep.mubr.f32.mxu0 %v366_v0  ;;  %253 = vmatprep.mubr.f32.mxu1 %v366_v0 }
  0x43   :  { %177 = vmatmul.mubr.f32.gmra.mxu0 %v41_v3  ;;  %254 = vmatmul.mubr.f32.gmra.mxu1 %v41_v3 }
  0xff   :  { %v172_v4 = vpop.f32.mrf.mxu0  ;;  %v249_v5 = vpop.f32.mrf.mxu1 }
 0x100   :  { %260 = vst [vmem:[#allocation7] sm:$0xff] %v172_v4  ;;  %262 = vst [vmem:[#allocation7 + $0x10] sm:$0xff] %v249_v5 }
 0x101   :  { %v174_v6 = vpop.f32.mrf.mxu0  ;;  %v251_v7 = vpop.f32.mrf.mxu1 }
 0x102   :  { %261 = vst [vmem:[#allocation7 + $0x8] sm:$0xff] %v174_v6  ;;  %263 = vst [vmem:[#allocation7 + $0x18] sm:$0xff] %v251_v7 }
 0x103   :  { %v178_v8 = vpop.f32.mrf.mxu0  ;;  %v255_v9 = vpop.f32.mrf.mxu1 }
 0x104   :  { %264 = vst [vmem:[#allocation7 + $0x20] sm:$0xff] %v178_v8  ;;  %266 = vst [vmem:[#allocation7 + $0x30] sm:$0xff] %v255_v9 }
 0x105   :  { %v180_v10 = vpop.f32.mrf.mxu0  ;;  %v257_v0 = vpop.f32.mrf.mxu1 }
 0x106   :  { %265 = vst [vmem:[#allocation7 + $0x28] sm:$0xff] %v180_v10  ;;  %267 = vst [vmem:[#allocation7 + $0x38] sm:$0xff] %v257_v0 }
 0x107   :  { %345 = shalt.err (!%p342_p0)
}
 0x108   :  { %279 = dma.vmem_to_hbm [thread:$0]  %s274_s1, 1024, %s404_s2, [#allocation4], %s364_s19, %s364_s19, %s365_s20  }
 0x109   :  { %358 = dma.done.wait [#allocation4], 1024  }
 0x10a   :  { %359 = vsyncadd [#allocation4], 4294966272 }
 0x10b   :  { %283 = vsyncpa [#allocation3], 1 }
 0x10c   :  { %284 = vsyncpa [#allocation6], 1 }
 0x10d   :  { %285 = vsyncpa [#allocation4], 1 }

</bundles_post_ra>
